<compile_context>
chip_gen: v7x
topology: tpu7x:2x2x1
jax: 0.10.0
libtpu: 0.0.40
codegen_flags: <defaults>
</compile_context>

<pallas_src>
import functools

import numpy as np
import jax
import jax.numpy as jnp
from jax import lax
from jax.experimental import pallas as pl
from jax.experimental.pallas import tpu as pltpu


def _round_up(x, m):
    return (x + m - 1) // m * m


def _pick_tile(dim, align, target):
    """Pick a tile size (multiple of `align`) and the padded dim.

    Prefers the largest `align`-multiple <= target that divides the
    align-rounded dim exactly (no padding waste); otherwise pads up to a
    multiple of `target`.
    """
    target = max(target, align)
    dim_a = _round_up(dim, align)
    if dim_a <= target:
        return dim_a, dim_a
    best = None
    t = align
    while t <= target:
        if dim_a % t == 0:
            best = t
        t += align
    if best is not None:
        return best, dim_a
    return target, _round_up(dim_a, target)


def _pad2d(x, rows, cols):
    r, c = x.shape
    if r == rows and c == cols:
        return x
    return jnp.pad(x, ((0, rows - r), (0, cols - c)))


# --------------------------------------------------------------------------
# Fused Pallas kernel: o = maybe_relu((a @ b) * scale + shift)
# a, b are bf16 tiles; accumulation and the per-column affine are f32.
# --------------------------------------------------------------------------
def _matmul_fused_kernel(a_ref, b_ref, scale_ref, shift_ref, o_ref, acc_ref,
                         *, relu):
    k = pl.program_id(2)

    @pl.when(k == 0)
    def _():
        acc_ref[...] = jnp.zeros_like(acc_ref)

    acc_ref[...] += jnp.dot(a_ref[...], b_ref[...],
                            preferred_element_type=jnp.float32)

    @pl.when(k == pl.num_programs(2) - 1)
    def _():
        y = acc_ref[...] * scale_ref[...] + shift_ref[...]
        if relu:
            y = jnp.maximum(y, 0.0)
        o_ref[...] = y.astype(o_ref.dtype)


def fused_matmul(a, b, scale, shift, *, relu, out_dtype=jnp.float32,
                 tm=256, tn=256, tk=2048):
    """Tiled Pallas matmul with fused per-column affine and optional ReLU."""
    M, K = a.shape
    K2, N = b.shape
    assert K == K2
    if a.dtype != jnp.bfloat16:
        a = a.astype(jnp.bfloat16)
    if b.dtype != jnp.bfloat16:
        b = b.astype(jnp.bfloat16)

    tm, Mp = _pick_tile(M, 8, tm)
    tn, Np = _pick_tile(N, 128, tn)
    tk, Kp = _pick_tile(K, 128, tk)

    a_p = _pad2d(a, Mp, Kp)
    b_p = _pad2d(b, Kp, Np)
    scale_p = _pad2d(scale.astype(jnp.float32).reshape(1, N), 1, Np)
    shift_p = _pad2d(shift.astype(jnp.float32).reshape(1, N), 1, Np)

    out = pl.pallas_call(
        functools.partial(_matmul_fused_kernel, relu=relu),
        out_shape=jax.ShapeDtypeStruct((Mp, Np), out_dtype),
        grid_spec=pltpu.PrefetchScalarGridSpec(
            num_scalar_prefetch=0,
            grid=(Mp // tm, Np // tn, Kp // tk),
            in_specs=[
                pl.BlockSpec((tm, tk), lambda i, j, k: (i, k)),
                pl.BlockSpec((tk, tn), lambda i, j, k: (k, j)),
                pl.BlockSpec((1, tn), lambda i, j, k: (0, j)),
                pl.BlockSpec((1, tn), lambda i, j, k: (0, j)),
            ],
            out_specs=pl.BlockSpec((tm, tn), lambda i, j, k: (i, j)),
            scratch_shapes=[pltpu.VMEM((tm, tn), jnp.float32)],
        ),
        compiler_params=pltpu.CompilerParams(
            dimension_semantics=("parallel", "parallel", "arbitrary"),
            vmem_limit_bytes=48 * 1024 * 1024),
    )(a_p, b_p, scale_p, shift_p)
    if (Mp, Np) != (M, N):
        out = out[:M, :N]
    return out


# --------------------------------------------------------------------------
# Glue: im2col patch extraction (bf16, reshapes/slices only) + conv wrapper.
# --------------------------------------------------------------------------
def _im2col(x, kh, kw, stride, pad):
    """x: (N, H, W, C) -> (N*Ho*Wo, kh*kw*C), feature order (kh, kw, C)."""
    N, H, W, C = x.shape
    xp = jnp.pad(x, ((0, 0), (pad, pad), (pad, pad), (0, 0)))
    Ho = (H + 2 * pad - kh) // stride + 1
    Wo = (W + 2 * pad - kw) // stride + 1
    cols = []
    for i in range(kh):
        for j in range(kw):
            cols.append(
                xp[:, i:i + stride * Ho:stride, j:j + stride * Wo:stride, :])
    patches = jnp.concatenate(cols, axis=-1)  # (N, Ho, Wo, kh*kw*C)
    return patches.reshape(N * Ho * Wo, kh * kw * C), Ho, Wo


def conv_bn_relu(x, c):
    """Conv2d + BatchNorm2d(eval) + ReLU via one fused Pallas matmul (bf16)."""
    N = x.shape[0]
    kh, kw, cin, cout = c["w"].shape
    patches, Ho, Wo = _im2col(x, kh, kw, c["stride"], c["pad"])
    y = fused_matmul(patches, c["w2d"], c["scale"], c["shift"], relu=True,
                     out_dtype=jnp.bfloat16, tm=256, tn=256, tk=2048)
    return y.reshape(N, Ho, Wo, cout)


# --------------------------------------------------------------------------
# Deterministic parameter construction (synthetic, mirrors STNHead.__init__).
# --------------------------------------------------------------------------
def init_stn_params(key, *, in_planes=1, gfc=64, n_downscale=3,
                    input_height=48, input_width=192,
                    num_ctrlpoints=4, hidden=1024, eps=1e-5):
    cfgs = [(in_planes, gfc, 3, 1, 1)]
    for i in range(n_downscale):
        cfgs.append((2 ** i * gfc, 2 ** (i + 1) * gfc, 4, 2, 1))
        cfgs.append((2 ** (i + 1) * gfc, 2 ** (i + 1) * gfc, 3, 1, 1))

    keys = jax.random.split(key, len(cfgs) + 2)
    convs = []
    for (cin, cout, ks, stride, pad), k in zip(cfgs, keys[:len(cfgs)]):
        std = float(np.sqrt(2.0 / (ks * ks * cout)))  # init_weights recipe
        w = (jax.random.normal(k, (ks, ks, cin, cout), jnp.float32)
             * std).astype(jnp.bfloat16)              # pre-cast once to bf16
        b = jnp.zeros((cout,), jnp.float32)           # conv bias zero
        gamma = jnp.ones((cout,), jnp.float32)        # BN eval-mode params
        beta = jnp.zeros((cout,), jnp.float32)
        mean = jnp.zeros((cout,), jnp.float32)
        var = jnp.ones((cout,), jnp.float32)
        scale = gamma / jnp.sqrt(var + eps)
        shift = beta + (b - mean) * scale
        convs.append(dict(
            w=w, w2d=w.reshape(ks * ks * cin, cout),   # pre-shaped 2D weight
            b=b, gamma=gamma, beta=beta, mean=mean, var=var,
            scale=scale, shift=shift, stride=stride, pad=pad))

    gfs_w = input_width // 2 ** n_downscale
    gfs_h = input_height // 2 ** n_downscale
    numel = gfs_w * gfs_h * gfc * 2 ** n_downscale

    k1, k2 = keys[len(cfgs):]
    # Linear weights stored (in_features, out_features); normal(0, 0.001).
    fc1_w0 = (jax.random.normal(k1, (numel, hidden), jnp.float32)
              * 0.001).astype(jnp.bfloat16)
    fc1_w1 = (jax.random.normal(k2, (hidden, hidden), jnp.float32)
              * 0.001).astype(jnp.bfloat16)

    # fc2: weight zeroed, bias = flattened target control points
    padW, padH, h, w = 24, 6, 36, 144
    tgt = np.float32([[padW, padH],
                      [padW, h - 1 + padH],
                      [w - 1 + padW, h - 1 + padH],
                      [w - 1 + padW, padH]])
    assert tgt.size == num_ctrlpoints * 2

    return dict(
        convs=convs,
        fc1_w0=fc1_w0, fc1_b0=jnp.zeros((hidden,), jnp.float32),
        fc1_w1=fc1_w1, fc1_b1=jnp.zeros((hidden,), jnp.float32),
        fc2_w=jnp.zeros((hidden, num_ctrlpoints * 2), jnp.bfloat16),
        fc2_b=jnp.asarray(tgt.reshape(-1)),
        numel=numel, num_ctrlpoints=num_ctrlpoints)


# --------------------------------------------------------------------------
# STNHead forward (Pallas) and a precision-matched pure-JAX reference.
# --------------------------------------------------------------------------
def stn_head_forward(params, x_nchw, return_intermediates=False):
    N = x_nchw.shape[0]
    x = jnp.transpose(x_nchw, (0, 2, 3, 1)).astype(jnp.bfloat16)  # NCHW->NHWC
    for c in params["convs"]:
        x = conv_bn_relu(x, c)
    # PyTorch x.view(-1, numel) flattens NCHW -> transpose back before flatten.
    feat = jnp.transpose(x, (0, 3, 1, 2)).reshape(N, -1)
    assert feat.shape[1] == params["numel"]

    ones_h = jnp.ones((params["fc1_b0"].shape[0],), jnp.float32)
    h = fused_matmul(feat, params["fc1_w0"], ones_h, params["fc1_b0"],
                     relu=True, out_dtype=jnp.bfloat16, tn=512, tk=2048)
    h = fused_matmul(h, params["fc1_w1"], ones_h, params["fc1_b1"],
                     relu=True, out_dtype=jnp.bfloat16, tn=512, tk=2048)
    ones_o = jnp.ones((params["fc2_b"].shape[0],), jnp.float32)
    out = fused_matmul(h, params["fc2_w"], ones_o, params["fc2_b"],
                       relu=False, out_dtype=jnp.float32, tn=128, tk=1024)
    out = out.reshape(N, params["num_ctrlpoints"], 2)
    if return_intermediates:
        return (out, out), {"conv_feat": feat, "fc1": h}
    return (out, out)


def reference_forward(params, x_nchw, eps=1e-5):
    """Pure-JAX reference with the same numerics (bf16 operands, f32 accum)."""
    N = x_nchw.shape[0]
    x = jnp.transpose(x_nchw, (0, 2, 3, 1)).astype(jnp.bfloat16)
    for c in params["convs"]:
        y = lax.conv_general_dilated(
            x, c["w"], window_strides=(c["stride"], c["stride"]),
            padding=[(c["pad"], c["pad"])] * 2,
            dimension_numbers=("NHWC", "HWIO", "NHWC"),
            preferred_element_type=jnp.float32)
        y = y + c["b"]
        scale = c["gamma"] / jnp.sqrt(c["var"] + eps)
        y = (y - c["mean"]) * scale + c["beta"]
        x = jnp.maximum(y, 0.0).astype(jnp.bfloat16)
    feat = jnp.transpose(x, (0, 3, 1, 2)).reshape(N, -1)
    h = jnp.maximum(
        jnp.dot(feat, params["fc1_w0"], preferred_element_type=jnp.float32)
        + params["fc1_b0"], 0.0).astype(jnp.bfloat16)
    h = jnp.maximum(
        jnp.dot(h, params["fc1_w1"], preferred_element_type=jnp.float32)
        + params["fc1_b1"], 0.0).astype(jnp.bfloat16)
    out = (jnp.dot(h, params["fc2_w"], preferred_element_type=jnp.float32)
           + params["fc2_b"])
    out = out.reshape(N, params["num_ctrlpoints"], 2)
    return out, {"conv_feat": feat, "fc1": h}


def _f32(x):
    return np.asarray(jnp.asarray(x, jnp.float32))


if __name__ == "__main__":
    key = jax.random.PRNGKey(0)
    k_x, k_p = jax.random.split(key)

    # Geometry implied by the module: 1-channel 48x192 input, small batch.
    batch = 2
    x = jax.random.normal(k_x, (batch, 1, 48, 192), jnp.float32)
    params = init_stn_params(k_p)

    (out, out_dup), inter = stn_head_forward(params, x,
                                             return_intermediates=True)
    out = jax.block_until_ready(out)

    # Validate against a pure-JAX reference with matched (bf16/f32) numerics.
    ref_out, ref_inter = reference_forward(params, x)
    np.testing.assert_allclose(_f32(inter["conv_feat"]),
                               _f32(ref_inter["conv_feat"]),
                               rtol=5e-2, atol=1e-2)
    np.testing.assert_allclose(_f32(inter["fc1"]), _f32(ref_inter["fc1"]),
                               rtol=5e-2, atol=1e-2)
    np.testing.assert_allclose(_f32(out), _f32(ref_out), rtol=1e-4, atol=1e-4)

    # With fc2.weight zeroed, output == target control points for every row.
    expected = np.broadcast_to(
        np.float32([24., 6., 24., 41., 167., 41., 167., 6.]).reshape(1, 4, 2),
        out.shape)
    np.testing.assert_allclose(np.asarray(out), expected, atol=1e-4)
    assert out.shape == (batch, params["num_ctrlpoints"], 2)
    assert out_dup.shape == out.shape  # forward returns (x, x)

    print("KERNEL_OK")
</pallas_src>

<mosaic_0001>
module attributes {stable_mosaic.version = 11 : i64} {
  func.func @_matmul_fused_kernel(%arg0: i32, %arg1: i32, %arg2: i32, %arg3: memref<256x128xbf16, #tpu.memory_space<vmem>>, %arg4: memref<128x128xbf16, #tpu.memory_space<vmem>>, %arg5: memref<1x128xf32, #tpu.memory_space<vmem>>, %arg6: memref<1x128xf32, #tpu.memory_space<vmem>>, %arg7: memref<256x128xbf16, #tpu.memory_space<vmem>>, %arg8: memref<256x128xf32, #tpu.memory_space<vmem>>) attributes {dimension_semantics = [#tpu.dimension_semantics<parallel>, #tpu.dimension_semantics<parallel>, #tpu.dimension_semantics<arbitrary>], iteration_bounds = array<i64: 72, 1, 1>, scalar_prefetch = 0 : i64, scratch_operands = 1 : i64, tpu.core_type = #tpu.core_type<tc>, window_params = [{transform_indices = @transform_0, window_bounds = array<i64: 256, 128>}, {transform_indices = @transform_1, window_bounds = array<i64: 128, 128>}, {transform_indices = @transform_2, window_bounds = array<i64: 1, 128>}, {transform_indices = @transform_3, window_bounds = array<i64: 1, 128>}, {transform_indices = @transform_4, window_bounds = array<i64: 256, 128>}]} {
    %c0_i32 = arith.constant 0 : i32
    %0 = arith.cmpi eq, %arg2, %c0_i32 : i32
    %1 = arith.extui %0 : i1 to i32
    %c0_i32_0 = arith.constant 0 : i32
    %2 = arith.cmpi ne, %1, %c0_i32_0 : i32
    scf.if %2 {
      %cst_10 = arith.constant 0.000000e+00 : f32
      %12 = vector.broadcast %cst_10 : f32 to vector<256x128xf32>
      %c0_11 = arith.constant 0 : index
      %c0_12 = arith.constant 0 : index
      %13 = vector.load %arg8[%c0_11, %c0_12] : memref<256x128xf32, #tpu.memory_space<vmem>>, vector<256x128xf32>
      tpu.vector_store %arg8[%c0_11, %c0_12], %12 {strides = array<i32>} : memref<256x128xf32, #tpu.memory_space<vmem>>, vector<256x128xf32>,
    } else {
    }
    %c0 = arith.constant 0 : index
    %c0_1 = arith.constant 0 : index
    %3 = vector.load %arg8[%c0, %c0_1] : memref<256x128xf32, #tpu.memory_space<vmem>>, vector<256x128xf32>
    %c0_2 = arith.constant 0 : index
    %c0_3 = arith.constant 0 : index
    %4 = vector.load %arg3[%c0_2, %c0_3] : memref<256x128xbf16, #tpu.memory_space<vmem>>, vector<256x128xbf16>
    %c0_4 = arith.constant 0 : index
    %c0_5 = arith.constant 0 : index
    %5 = vector.load %arg4[%c0_4, %c0_5] : memref<128x128xbf16, #tpu.memory_space<vmem>>, vector<128x128xbf16>
    %cst = arith.constant dense<0.000000e+00> : vector<256x128xf32>
    %6 = tpu.matmul %4, %5, %cst {dimension_numbers = #tpu.dot_dimension_numbers<[1], [0], [0], [1], [0, 0, 1, 1], [], []>} : vector<256x128xbf16>, vector<128x128xbf16>, vector<256x128xf32> -> vector<256x128xf32>
    %7 = arith.addf %3, %6 : vector<256x128xf32>
    %c0_6 = arith.constant 0 : index
    %c0_7 = arith.constant 0 : index
    %8 = vector.load %arg8[%c0_6, %c0_7] : memref<256x128xf32, #tpu.memory_space<vmem>>, vector<256x128xf32>
    tpu.vector_store %arg8[%c0_6, %c0_7], %7 {strides = array<i32>} : memref<256x128xf32, #tpu.memory_space<vmem>>, vector<256x128xf32>,
    %c0_i32_8 = arith.constant 0 : i32
    %9 = arith.cmpi eq, %arg2, %c0_i32_8 : i32
    %10 = arith.extui %9 : i1 to i32
    %c0_i32_9 = arith.constant 0 : i32
    %11 = arith.cmpi ne, %10, %c0_i32_9 : i32
    scf.if %11 {
      %c0_10 = arith.constant 0 : index
      %c0_11 = arith.constant 0 : index
      %12 = vector.load %arg8[%c0_10, %c0_11] : memref<256x128xf32, #tpu.memory_space<vmem>>, vector<256x128xf32>
      %c0_12 = arith.constant 0 : index
      %c0_13 = arith.constant 0 : index
      %13 = vector.load %arg5[%c0_12, %c0_13] : memref<1x128xf32, #tpu.memory_space<vmem>>, vector<1x128xf32>
      %14 = vector.broadcast %13 : vector<1x128xf32> to vector<256x128xf32>
      %15 = arith.mulf %12, %14 : vector<256x128xf32>
      %c0_14 = arith.constant 0 : index
      %c0_15 = arith.constant 0 : index
      %16 = vector.load %arg6[%c0_14, %c0_15] : memref<1x128xf32, #tpu.memory_space<vmem>>, vector<1x128xf32>
      %17 = vector.broadcast %16 : vector<1x128xf32> to vector<256x128xf32>
      %18 = arith.addf %15, %17 : vector<256x128xf32>
      %cst_16 = arith.constant 0.000000e+00 : f32
      %19 = vector.broadcast %cst_16 : f32 to vector<256x128xf32>
      %20 = arith.maximumf %18, %19 : vector<256x128xf32>
      %21 = arith.truncf %20 : vector<256x128xf32> to vector<256x128xbf16>
      %c0_17 = arith.constant 0 : index
      %c0_18 = arith.constant 0 : index
      %22 = vector.load %arg7[%c0_17, %c0_18] : memref<256x128xbf16, #tpu.memory_space<vmem>>, vector<256x128xbf16>
      tpu.vector_store %arg7[%c0_17, %c0_18], %21 {strides = array<i32>} : memref<256x128xbf16, #tpu.memory_space<vmem>>, vector<256x128xbf16>,
    } else {
    }
    return
  }
  func.func @transform_0(%arg0: i32, %arg1: i32, %arg2: i32) -> (i32, i32) {
    %c0_i32 = arith.constant 0 : i32
    return %arg0, %arg2 : i32, i32
  }
  func.func @transform_1(%arg0: i32, %arg1: i32, %arg2: i32) -> (i32, i32) {
    %c0_i32 = arith.constant 0 : i32
    return %arg2, %arg1 : i32, i32
  }
  func.func @transform_2(%arg0: i32, %arg1: i32, %arg2: i32) -> (i32, i32) {
    %c0_i32 = arith.constant 0 : i32
    %c0_i32_0 = arith.constant 0 : i32
    return %c0_i32, %arg1 : i32, i32
  }
  func.func @transform_3(%arg0: i32, %arg1: i32, %arg2: i32) -> (i32, i32) {
    %c0_i32 = arith.constant 0 : i32
    %c0_i32_0 = arith.constant 0 : i32
    return %c0_i32, %arg1 : i32, i32
  }
  func.func @transform_4(%arg0: i32, %arg1: i32, %arg2: i32) -> (i32, i32) {
    %c0_i32 = arith.constant 0 : i32
    return %arg0, %arg1 : i32, i32
  }
}

</mosaic_0001>

<bundles_post_ra>
// kernel: tpu_custom_call.1
= control target key start
LH: loop header
LB: loop body
LE: loop exit
PB: predicated region body
PF: predicated region fallthrough
CT: control target
= control target key end

     0   :  { %9 = vsyncpa [#allocation4], 0  ;;  %s2290_s0 = inlined_call_operand.hbm [shape: bf16[18432,128], index: 0, kind: input, shape index: {}]   ;;  %s2291_s1 = inlined_call_operand.hbm [shape: bf16[128,128], index: 1, kind: input, shape index: {}]   ;;  %s2292_s2 = inlined_call_operand.hbm [shape: f32[1,128], index: 2, kind: input, shape index: {}]   ;;  %s2293_s3 = inlined_call_operand.hbm [shape: f32[1,128], index: 3, kind: input, shape index: {}]   ;;  %s2294_s4 = inlined_call_operand.hbm [shape: bf16[18432,128], index: 4, kind: output, shape index: {}]  }
   0x1   :  { %11 = vsyncpa [#allocation4 + $0x1], 0 }
   0x2   :  { %12 = vsyncpa [#allocation7], 0 }
   0x3   :  { %13 = vsyncpa [#allocation10], 0 }
   0x4   :  { %14 = vsyncpa [#allocation5], 0 }
   0x5   :  { %16 = vsyncpa [#allocation5 + $0x1], 0  ;;  %s1896_s15 = smov 0   ;;  %s1898_s16 = smov 0  }
   0x6   :  { %s1900_s17 = smov 0   ;;  %s1902_s18 = smov 0  }
   0x7   :  { %s1904_s19 = smov 0   ;;  %s1906_s20 = smov 0  }
   0x8 LB: > { %s1239_s21 = sadd.s32 4294967295, %s1860_s20   ;;  %s1240_s22 = sadd.s32 4294967294, %s1860_s20   ;;  %s1860_s20 = sphi %s1906_s20, %s22_s20   ;;  %s1856_s19 = sphi %s1904_s19, %s2320_s19   ;;  %s1852_s18 = sphi %s1902_s18, %s2319_s18   ;;  %s1848_s17 = sphi %s1900_s17, %s2318_s17   ;;  %s1844_s16 = sphi %s1898_s16, %s2317_s16   ;;  %s1840_s15 = sphi %s1896_s15, %s2316_s15  }
   0x9   : > { %p63_p0 = scmp.ne.s32.totalorder %s1844_s16, %s1840_s15  ;;  %p1930_p1 = scmp.eq.s32.totalorder %s1239_s21, 0 }
   0xa   : > { %p1934_p2 = scmp.eq.s32.totalorder %s1239_s21, 71  ;;  %p175_p3 = scmp.eq.s32.totalorder %s1240_s22, 71 }
   0xb   : > { %s2300_s23 = scalar_select %p1930_p1, 1, 0 }
   0xc   : > { %s2301_s24 = scalar_select %p1934_p2, 1, 0 }
   0xd   : > { %p1940_p4 = por %p1930_p1, %p63_p0  ;;  %p1241_p5 = scmp.ge.s32.totalorder %s1860_s20, 1 }
   0xe   : > { %p1945_p6 = por %p175_p3, %p63_p0  ;;  %p182_p7 = scmp.lt.s32.totalorder %s1860_s20, 73 }
   0xf   : > { %s2302_s25 = scalar_select %p1940_p4, 1, 0 }
  0x10   : > { %s2303_s26 = scalar_select %p1945_p6, 1, 0 }
  0x11   : > { %p1950_p8 = pnand %p1241_p5, %p182_p7  ;;  %s1862_s28 = smov [#allocation6]  }
  0x12   : > { %2304 = sst [smem:[#allocation16_spill]] %s2303_s26  ;;  %s198_s29 = sshll.u32 %s1862_s28, 4  ;;  %s1954_s29 = int_to_ptr.vmem [resolvable:$true] %s198_s29 }
  0x13   : > { %s2305_s27 = scalar_select %p1950_p8, 1, 0 }
  0x14   : > { %p1551_p9 = pneg %p1950_p8  ;;  %s1863_s5 = smov [#allocation8]  }
  0x15   : > { %s214_s6 = sshll.u32 %s1863_s5, 4  ;;  %s1864_s7 = smov [#allocation9]   ;;  %s1964_s6 = int_to_ptr.vmem [resolvable:$true] %s214_s6 }
  0x16   : > { %p1960_p10 = pnand %p1551_p9, %p1930_p1  ;;  %s1966_s8 = sshll.u32 %s1864_s7, 4  ;;  %s228_s8 = int_to_ptr.vmem [resolvable:$true] %s1966_s8 }
  0x17   : > { %s1656_s11 = scalar_lea.hbm %s2291_s1, 1024 }
  0x18   : > { %p1657_p11 = scmp.ne.s32.totalorder %s2291_s1, %s1656_s11  ;;  %p1976_p12 = pneg %p1960_p10 }
  0x19   : > { %p1663_p3 = scmp.lt.u32.totalorder %s1656_s11, %s2291_s1 }
  0x1a   : > { %p1659_p13 = pnand %p1976_p12, %p1657_p11 }
  0x1c   : > { %p1660_p0 = pneg %p1659_p13 }
  0x1e   : > { %p1665_p5 = pnand %p1663_p3, %p1660_p0 }
  0x20   : > { %1668 = shalt.err (!%p1665_p5)
}
  0x21   : > { %s1669_s28 = scalar_lea.vmem %s1954_s29, 1024  ;;  %p1677_p1 = scmp.lt.s32.totalorder %s1954_s29, %s1954_s29 }
  0x22   : > { %p1670_p7 = scmp.ne.s32.totalorder %s1954_s29, %s1669_s28  ;;  %p1678_p4 = scmp.lt.s32.totalorder %s1669_s28, %s1669_s28 }
  0x24   : > { %p1672_p9 = pnand %p1670_p7, %p1976_p12  ;;  %p1679_p11 = por %p1678_p4, %p1677_p1 }
  0x26   : > { %p1673_p6 = pneg %p1672_p9 }
  0x28   : > { %p1680_p13 = pnand %p1679_p11, %p1673_p6 }
  0x2a   : > { %1683 = shalt.err (!%p1680_p13)
}
  0x2b   : > { %s1865_s5 = smov 64   ;;  %s1866_s7 = smov 4  }
  0x2c   : > { %1554 = dma.hbm_to_vmem [thread:$0]  (!%p1960_p10), %s2291_s1, 1024, %s1954_s29, [#allocation7], %s1865_s5, %s1865_s5, %s1866_s7  }
  0x2d   : > { %s1684_s13 = scalar_lea.hbm %s2292_s2, 16 }
  0x2e   : > { %p1685_p1 = scmp.ne.s32.totalorder %s2292_s2, %s1684_s13  ;;  %p1691_p0 = scmp.lt.u32.totalorder %s1684_s13, %s2292_s2 }
  0x30   : > { %p1687_p4 = pnand %p1685_p1, %p1976_p12 }
  0x32   : > { %p1688_p6 = pneg %p1687_p4 }
  0x34   : > { %p1693_p3 = pnand %p1691_p0, %p1688_p6 }
  0x36   : > { %1696 = shalt.err (!%p1693_p3)
}
  0x37   : > { %s1697_s29 = scalar_lea.vmem %s1964_s6, 16  ;;  %s1704_s9 = scalar_lea.vmem %s1964_s6, 32 }
  0x38   : > { %p1698_p5 = scmp.ne.s32.totalorder %s1964_s6, %s1697_s29  ;;  %p1705_p11 = scmp.lt.s32.totalorder %s1964_s6, %s1964_s6 }
  0x39   : > { %p1706_p13 = scmp.lt.s32.totalorder %s1704_s9, %s1697_s29 }
  0x3a   : > { %p1700_p7 = pnand %p1698_p5, %p1976_p12 }
  0x3b   : > { %p1707_p1 = por %p1706_p13, %p1705_p11 }
  0x3c   : > { %p1701_p9 = pneg %p1700_p7 }
  0x3e   : > { %p1708_p4 = pnand %p1707_p1, %p1701_p9 }
  0x40   : > { %1711 = shalt.err (!%p1708_p4)
}
  0x41   : > { %1557 = dma.hbm_to_vmem [thread:$0]  (!%p1960_p10), %s2292_s2, 16, %s1964_s6, [#allocation7]  }
  0x42   : > { %s1712_s13 = scalar_lea.hbm %s2293_s3, 16 }
  0x43   : > { %p1713_p6 = scmp.ne.s32.totalorder %s2293_s3, %s1712_s13  ;;  %p1719_p5 = scmp.lt.u32.totalorder %s1712_s13, %s2293_s3 }
  0x45   : > { %p1715_p0 = pnand %p1713_p6, %p1976_p12 }
  0x47   : > { %p1716_p3 = pneg %p1715_p0 }
  0x49   : > { %p1721_p7 = pnand %p1719_p5, %p1716_p3 }
  0x4b   : > { %1724 = shalt.err (!%p1721_p7)
}
  0x4c   : > { %s1725_s9 = scalar_lea.vmem %s228_s8, 16  ;;  %s1732_s6 = scalar_lea.vmem %s228_s8, 32 }
  0x4d   : > { %p1726_p9 = scmp.ne.s32.totalorder %s228_s8, %s1725_s9  ;;  %p1733_p1 = scmp.lt.s32.totalorder %s228_s8, %s228_s8 }
  0x4e   : > { %p1734_p4 = scmp.lt.s32.totalorder %s1732_s6, %s1725_s9 }
  0x4f   : > { %p1728_p11 = pnand %p1726_p9, %p1976_p12 }
  0x50   : > { %p1735_p8 = por %p1734_p4, %p1733_p1 }
  0x51   : > { %p1729_p13 = pneg %p1728_p11 }
  0x53   : > { %p1736_p2 = pnand %p1735_p8, %p1729_p13 }
  0x55   : > { %1739 = shalt.err (!%p1736_p2)
}
  0x56   : > { %1560 = dma.hbm_to_vmem [thread:$0]  (!%p1960_p10), %s2293_s3, 16, %s228_s8, [#allocation10]  }
  0x57   : > { %s50_s14 = sadd.s32 1, %s1848_s17  ;;  %s41_s11 = sadd.s32 1, %s1856_s19 }
  0x58   : > { %p57_p2 = scmp.ne.s32.totalorder %s1848_s17, %s1844_s16  ;;  %p43_p8 = scmp.ge.s32.totalorder %s41_s11, 72 }
  0x59   : > { %p58_p12 = scmp.eq.s32.totalorder %s1860_s20, 0  ;;  %p2308_p6 = scmp.ne.s32.totalorder %s2301_s24, 0 }
  0x5a   : > { %p1572_p3 = scmp.lt.s32.totalorder %s1860_s20, 72  ;;  %s2322_s11 = smov (%p43_p8, %s41_s11), 0 }
  0x5b   : > { %p2050_p0 = por %p2308_p6, %p57_p2  ;;  %p59_p5 = por %p58_p12, %p57_p2 }
  0x5c   : > { %s238_s12 = sand.u32 1, %s1848_s17   ;;  %s45_s13 = ssub.s32 %s1856_s19, %s2322_s11 }
  0x5d   : > { %p48_p7 = scmp.eq.s32.totalorder %s45_s13, 0  ;;  %s1246_s8 = sshll.u32 %s238_s12, 7 }
  0x5e   : > { %s1318_s21 = sshll.u32 %s1856_s19, 11  ;;  %s242_s9 = scalar_lea.vmem [#allocation3], %s1246_s8 }
  0x5f   : > { %s2062_s22 = scalar_select %p48_p7, %s1848_s17, %s50_s14  }
  0x60   : > { %s2067_s24 = scalar_lea.hbm %s2290_s0, %s1318_s21  ;;  %s250_s6 = sshll.u32 %s242_s9, 4  ;;  %s2069_s6 = int_to_ptr.vmem [resolvable:$true] %s250_s6 }
  0x61   : > { %p2073_p10 = pnand %p1572_p3, %p59_p5  ;;  %s2077_s10 = scalar_lea.sflag [#allocation4], %s238_s12 }
  0x62   : > { %s1740_s14 = scalar_lea.hbm %s2067_s24, 2048  ;;  %s1745_s21 = scalar_lea.hbm %s2290_s0, 147456 }
  0x63   : > { %p1741_p9 = scmp.ne.s32.totalorder %s2067_s24, %s1740_s14  ;;  %p1742_p11 = pneg %p2073_p10 }
  0x64   : > { %p1746_p4 = scmp.lt.u32.totalorder %s2067_s24, %s2290_s0  ;;  %p1747_p2 = scmp.lt.u32.totalorder %s1745_s21, %s1740_s14 }
  0x65   : > { %p1743_p13 = pnand %p1742_p11, %p1741_p9  ;;  %p1749_p12 = scmp.lt.u32.totalorder %s1740_s14, %s2067_s24 }
  0x66   : > { %p1748_p8 = por %p1747_p2, %p1746_p4 }
  0x67   : > { %p1744_p1 = pneg %p1743_p13 }
  0x68   : > { %p1750_p6 = por %p1749_p12, %p1748_p8 }
  0x6a   : > { %p1751_p3 = pnand %p1750_p6, %p1744_p1 }
  0x6c   : > { %1754 = shalt.err (!%p1751_p3)
}
  0x6d   : > { %s1755_s12 = scalar_lea.vmem %s2069_s6, 2048  ;;  %s1867_s9 = smov [#allocation3]  }
  0x6e   : > { %p1756_p5 = scmp.ne.s32.totalorder %s2069_s6, %s1755_s12  ;;  %s1760_s13 = sshll.u32 %s1867_s9, 4  ;;  %s1761_s13 = int_to_ptr.vmem [resolvable:$false] %s1760_s13 }
  0x6f   : > { %s1762_s8 = scalar_lea.vmem %s1761_s13, 4096  ;;  %p1763_p13 = scmp.lt.s32.totalorder %s2069_s6, %s1761_s13 }
  0x70   : > { %p1758_p7 = pnand %p1756_p5, %p1742_p11  ;;  %p1764_p4 = scmp.lt.s32.totalorder %s1762_s8, %s1755_s12 }
  0x72   : > { %p1759_p9 = pneg %p1758_p7  ;;  %p1765_p2 = por %p1764_p4, %p1763_p13 }
  0x74   : > { %p1766_p8 = pnand %p1765_p2, %p1759_p9 }
  0x76   : > { %1769 = shalt.err (!%p1766_p8)
}
  0x77   : > { %1564 = dma.hbm_to_vmem [thread:$0]  (!%p2073_p10), %s2067_s24, 2048, %s2069_s6, %s2077_s10, %s1865_s5, %s1865_s5, %s1866_s7  }
  0x78   : > { %p2311_p11 = scmp.ne.s32.totalorder %s2305_s27, 0 }
  0x79   : > { %s2111_s14 = sand.u32 (!%p2311_p11), 1, %s1844_s16   ;;  %p2312_p1 = scmp.ne.s32.totalorder (!%p2311_p11), %s2302_s25, 0 }
  0x7a   : > { %262 = sbr.rel (%p2311_p11) target bundleno = 431 (0x1af), region = 36  ;;  %s1250_s21 = sshll.u32 (!%p2311_p11), %s2111_s14, 7 }
  0x7b   : > { %s265_s28 = scalar_lea.sflag (!%p2311_p11), [#allocation4], %s2111_s14  ;;  %s2117_s26 = scalar_lea.vmem (!%p2311_p11), [#allocation3], %s1250_s21 }
  0x81   : > { %1823 = dma.done.wait (%p2312_p1), %s265_s28, 2048  }
  0x82   : > { %1825 = vsyncadd (%p2312_p1), %s265_s28, 4294965248  ;;  %p2313_p10 = scmp.ne.s32.totalorder %s2300_s23, 0 }
  0x84   : > { %1827 = dma.done.wait (%p2313_p10), [#allocation7], 1040  }
  0x85   : > { %1829 = vsyncadd (%p2313_p10), [#allocation7], 4294966256 }
  0x86   : > { %1831 = dma.done.wait (%p2313_p10), [#allocation10], 16  }
  0x87   : > { %1833 = vsyncadd (%p2313_p10), [#allocation10], 4294967280  ;;  %v1632_v0 = vld [vmem:[#allocation6] sm:$0xff]   ;;  %v1633_v1 = vld [vmem:[#allocation6 + $0x8] sm:$0xff]   ;;  %s2173_s23 = scalar_lea.vmem [#allocation11], %s1250_s21  ;;  %s1351_s25 = sshll.u32 %s1852_s18, 11 }
  0x88   : > { %1471 = vmatprep.subr.bf16.mxu0 %v1632_v0  ;;  %1519 = vmatprep.subr.bf16.mxu1 %v1632_v0  ;;  %v1634_v2 = vld [vmem:[#allocation6 + $0x10] sm:$0xff]   ;;  %v1635_v3 = vld [vmem:[#allocation6 + $0x18] sm:$0xff]   ;;  %v1640_v4 = vld [vmem:[%s2117_s26] sm:$0xff]   ;;  %s1114_s27 = sshll.u32 %s2173_s23, 4  ;;  %s2236_s18 = scalar_lea.hbm %s2294_s4, %s1351_s25  ;;  %s2238_s27 = int_to_ptr.vmem [resolvable:$true] %s1114_s27 }
  0x89   : > { %1472 = vmatpush3.bf16.msra.mxu0 %v1632_v0  ;;  %1527 = vmatpush3.bf16.msra.mxu1 %v1632_v0  ;;  %v1641_v5 = vld [vmem:[%s2117_s26 + $0x40] sm:$0xff]   ;;  %v1637_v7 = vld [vmem:[#allocation6 + $0x28] sm:$0xff]   ;;  %v1638_v8 = vld [vmem:[#allocation6 + $0x30] sm:$0xff]   ;;  %s1100_s24 = scalar_lea.sflag [#allocation5], %s2111_s14  ;;  %s1770_s6 = scalar_lea.vmem %s2238_s27, 2048 }
  0x8a   : > { %1473 = vmatprep.subr.bf16.mxu0 %v1633_v1  ;;  %1520 = vmatprep.subr.bf16.mxu1 %v1633_v1  ;;  %v1636_v6 = vld [vmem:[#allocation6 + $0x20] sm:$0xff]   ;;  %v1639_v9 = vld [vmem:[#allocation6 + $0x38] sm:$0xff]   ;;  %v1642_v10 = vld [vmem:[%s2117_s26 + $0x8] sm:$0xff]   ;;  %p1771_p12 = scmp.ne.s32.totalorder %s2238_s27, %s1770_s6  ;;  %s1868_s10 = smov [#allocation11]  }
  0x8b   : > { %1487 = vmatprep.mubr.bf16.mxu0 %v1640_v4  ;;  %1503 = vmatprep.mubr.bf16.mxu1 %v1641_v5  ;;  %v1643_v11 = vld [vmem:[%s2117_s26 + $0x48] sm:$0xff]   ;;  %v1644_v12 = vld [vmem:[%s2117_s26 + $0x10] sm:$0xff]   ;;  %v1646_v14 = vld [vmem:[%s2117_s26 + $0x18] sm:$0xff]   ;;  %s1774_s29 = sshll.u32 %s1868_s10, 4  ;;  %s1775_s29 = int_to_ptr.vmem [resolvable:$false] %s1774_s29 }
  0x8c   : > { %v1645_v13 = vld [vmem:[%s2117_s26 + $0x50] sm:$0xff]   ;;  %v1647_v15 = vld [vmem:[%s2117_s26 + $0x58] sm:$0xff]   ;;  %v1648_v16 = vld [vmem:[%s2117_s26 + $0x20] sm:$0xff]   ;;  %p1772_p6 = pnand %p1771_p12, %p2050_p0  ;;  %s1776_s12 = scalar_lea.vmem %s1775_s29, 4096 }
  0x8d   : > { %1474 = vmatpush3.bf16.msra.mxu0 %v1633_v1  ;;  %1528 = vmatpush3.bf16.msra.mxu1 %v1633_v1  ;;  %v1649_v17 = vld [vmem:[%s2117_s26 + $0x60] sm:$0xff]   ;;  %v1650_v18 = vld [vmem:[%s2117_s26 + $0x28] sm:$0xff]   ;;  %v1652_v20 = vld [vmem:[%s2117_s26 + $0x30] sm:$0xff]   ;;  %p1777_p5 = scmp.lt.s32.totalorder %s2238_s27, %s1775_s29  ;;  %p1778_p7 = scmp.lt.s32.totalorder %s1776_s12, %s1770_s6 }
  0x8e   : > { %1475 = vmatprep.subr.bf16.mxu0 %v1634_v2  ;;  %1521 = vmatprep.subr.bf16.mxu1 %v1634_v2  ;;  %v1651_v19 = vld [vmem:[%s2117_s26 + $0x68] sm:$0xff]   ;;  %v1653_v21 = vld [vmem:[%s2117_s26 + $0x70] sm:$0xff]   ;;  %v1654_v22 = vld [vmem:[%s2117_s26 + $0x38] sm:$0xff]   ;;  %p1773_p3 = pneg %p1772_p6 }
  0x8f   : > { %v1655_v23 = vld [vmem:[%s2117_s26 + $0x78] sm:$0xff]   ;;  %v2147_v24 = vld [vmem:[#allocation8] ss:$0 sm:$0xff]  ;;  %v2149_v26 = vld [vmem:[#allocation9] ss:$0 sm:$0xff]  ;;  %p1779_p9 = por %p1778_p7, %p1777_p5 }
  0x91   : > { %1476 = vmatpush3.bf16.msra.mxu0 %v1634_v2  ;;  %1529 = vmatpush3.bf16.msra.mxu1 %v1634_v2  ;;  %p1780_p13 = pnand %p1779_p9, %p1773_p3 }
  0x92   : > { %1477 = vmatprep.subr.bf16.mxu0 %v1635_v3  ;;  %1522 = vmatprep.subr.bf16.mxu1 %v1635_v3 }
  0x95   : > { %1478 = vmatpush3.bf16.msra.mxu0 %v1635_v3  ;;  %1530 = vmatpush3.bf16.msra.mxu1 %v1635_v3 }
  0x96   : > { %1479 = vmatprep.subr.bf16.mxu0 %v1636_v6  ;;  %1523 = vmatprep.subr.bf16.mxu1 %v1636_v6 }
  0x99   : > { %1480 = vmatpush3.bf16.msra.mxu0 %v1636_v6  ;;  %1531 = vmatpush3.bf16.msra.mxu1 %v1636_v6 }
  0x9a   : > { %1481 = vmatprep.subr.bf16.mxu0 %v1637_v7  ;;  %1524 = vmatprep.subr.bf16.mxu1 %v1637_v7 }
  0x9d   : > { %1482 = vmatpush3.bf16.msra.mxu0 %v1637_v7  ;;  %1532 = vmatpush3.bf16.msra.mxu1 %v1637_v7 }
  0x9e   : > { %1483 = vmatprep.subr.bf16.mxu0 %v1638_v8  ;;  %1525 = vmatprep.subr.bf16.mxu1 %v1638_v8 }
  0xa1   : > { %1484 = vmatpush3.bf16.msra.mxu0 %v1638_v8  ;;  %1533 = vmatpush3.bf16.msra.mxu1 %v1638_v8 }
  0xa2   : > { %1485 = vmatprep.subr.bf16.mxu0 %v1639_v9  ;;  %1526 = vmatprep.subr.bf16.mxu1 %v1639_v9 }
  0xa5   : > { %1486 = vmatpush3.bf16.msra.mxu0 %v1639_v9  ;;  %1534 = vmatpush3.bf16.msra.mxu1 %v1639_v9 }
  0xa8   : > { %1488 = vmatmul.mubr.bf16.vlgmr.msra.gmra.mrb[0].mxu0 %v1642_v10  ;;  %1504 = vmatmul.mubr.bf16.vlgmr.msra.gmra.mrb[0].mxu1 %v1643_v11 }
  0xa9   : > { %1491 = vmatprep.mubr.bf16.mxu0 %v1644_v12  ;;  %1507 = vmatprep.mubr.bf16.mxu1 %v1645_v13 }
  0xb0   : > { %1492 = vmatmul.mubr.bf16.gmra.mrb[4].mxu0 %v1646_v14  ;;  %1508 = vmatmul.mubr.bf16.gmra.mrb[4].mxu1 %v1647_v15 }
  0xb1   : > { %1495 = vmatprep.mubr.bf16.mxu0 %v1648_v16  ;;  %1511 = vmatprep.mubr.bf16.mxu1 %v1649_v17 }
  0xb8   : > { %1496 = vmatmul.mubr.bf16.gmra.mrb[8].mxu0 %v1650_v18  ;;  %1512 = vmatmul.mubr.bf16.gmra.mrb[8].mxu1 %v1651_v19 }
  0xb9   : > { %1499 = vmatprep.mubr.bf16.mxu0 %v1652_v20  ;;  %1515 = vmatprep.mubr.bf16.mxu1 %v1653_v21 }
  0xc0   : > { %1500 = vmatmul.mubr.bf16.gmra.mrb[12].mxu0 %v1654_v22  ;;  %1516 = vmatmul.mubr.bf16.gmra.mrb[12].mxu1 %v1655_v23 }
 0x17b   : > { %v1489_v25 = vpop.f32.mrb[0].mxu0  ;;  %v1505_v27 = vpop.f32.mrb[0].mxu1 }
 0x17c   : > { %v838_v28 = vmul.f32 %v1489_v25, %v2147_v24  ;;  %v854_v29 = vmul.f32 %v1505_v27, %v2147_v24  ;;  %v603_v30 = vpop.f32.mrb[1].mxu0  ;;  %v667_v31 = vpop.f32.mrb[1].mxu1 }
 0x17d   : > { %v836_v32 = vmul.f32 %v2147_v24, %v603_v30  ;;  %v852_v33 = vmul.f32 %v2147_v24, %v667_v31  ;;  %v1490_v34 = vpop.f32.mrb[2].mxu0  ;;  %v1506_v35 = vpop.f32.mrb[2].mxu1 }
 0x17e   : > { %v877_v36 = vadd.f32 %v2149_v26, %v838_v28  ;;  %v893_v37 = vadd.f32 %v2149_v26, %v854_v29  ;;  %v839_v38 = vmul.f32 %v1490_v34, %v2147_v24  ;;  %v855_v39 = vmul.f32 %v1506_v35, %v2147_v24  ;;  %v606_v40 = vpop.f32.mrb[3].mxu0  ;;  %v670_v41 = vpop.f32.mrb[3].mxu1 }
 0x17f   : > { %v875_v42 = vadd.f32 %v2149_v26, %v836_v32  ;;  %v891_v43 = vadd.f32 %v2149_v26, %v852_v33  ;;  %v837_v44 = vmul.f32 %v2147_v24, %v606_v40  ;;  %v853_v45 = vmul.f32 %v2147_v24, %v670_v41 }
 0x180   : > { %v878_v46 = vadd.f32 %v2149_v26, %v839_v38  ;;  %v894_v47 = vadd.f32 %v2149_v26, %v855_v39  ;;  %v909_v50 = vmax.f32 %v877_v36, 0.0  ;;  %v925_v51 = vmax.f32 %v893_v37, 0.0 }
 0x181   : > { %v876_v48 = vadd.f32 %v2149_v26, %v837_v44  ;;  %v892_v49 = vadd.f32 %v2149_v26, %v853_v45  ;;  %v907_v54 = vmax.f32 %v875_v42, 0.0  ;;  %v923_v55 = vmax.f32 %v891_v43, 0.0 }
 0x182   : > { %v910_v52 = vmax.f32 %v878_v46, 0.0  ;;  %v926_v53 = vmax.f32 %v894_v47, 0.0 }
 0x183   : > { %v908_v56 = vmax.f32 %v876_v48, 0.0  ;;  %v924_v57 = vmax.f32 %v892_v49, 0.0  ;;  %v1493_v58 = vpop.f32.mrb[4].mxu0  ;;  %v1509_v59 = vpop.f32.mrb[4].mxu1 }
 0x184   : > { %v1360_v60 = vpack.c.bf16 %v910_v52, %v909_v50  ;;  %v1400_v61 = vpack.c.bf16 %v926_v53, %v925_v51  ;;  %v842_v62 = vmul.f32 %v1493_v58, %v2147_v24  ;;  %v858_v63 = vmul.f32 %v1509_v59, %v2147_v24  ;;  %v619_v0 = vpop.f32.mrb[5].mxu0  ;;  %v683_v1 = vpop.f32.mrb[5].mxu1 }
 0x185   : > { %v1355_v2 = vpack.c.bf16 %v908_v56, %v907_v54  ;;  %v1395_v3 = vpack.c.bf16 %v924_v57, %v923_v55  ;;  %v840_v4 = vmul.f32 %v2147_v24, %v619_v0  ;;  %v856_v5 = vmul.f32 %v2147_v24, %v683_v1  ;;  %v1494_v6 = vpop.f32.mrb[6].mxu0  ;;  %v1510_v7 = vpop.f32.mrb[6].mxu1 }
 0x186   : > { %1432 = vst [vmem:[%s2173_s23 + $0x8] sm:$0xff] %v1360_v60   ;;  %1440 = vst [vmem:[%s2173_s23 + $0x48] sm:$0xff] %v1400_v61   ;;  %v881_v8 = vadd.f32 %v2149_v26, %v842_v62  ;;  %v897_v9 = vadd.f32 %v2149_v26, %v858_v63  ;;  %v843_v10 = vmul.f32 %v1494_v6, %v2147_v24  ;;  %v622_v12 = vpop.f32.mrb[7].mxu0  ;;  %v686_v13 = vpop.f32.mrb[7].mxu1 }
 0x187   : > { %v859_v11 = vmul.f32 %v1510_v7, %v2147_v24  ;;  %1356 = vst [vmem:[%s2173_s23] sm:$0xff] %v1355_v2   ;;  %1439 = vst [vmem:[%s2173_s23 + $0x40] sm:$0xff] %v1395_v3   ;;  %v879_v14 = vadd.f32 %v2149_v26, %v840_v4  ;;  %v895_v15 = vadd.f32 %v2149_v26, %v856_v5 }
 0x188   : > { %v841_v16 = vmul.f32 %v2147_v24, %v622_v12  ;;  %v857_v17 = vmul.f32 %v2147_v24, %v686_v13  ;;  %v882_v18 = vadd.f32 %v2149_v26, %v843_v10  ;;  %v913_v22 = vmax.f32 %v881_v8, 0.0 }
 0x189   : > { %v898_v19 = vadd.f32 %v2149_v26, %v859_v11  ;;  %v929_v23 = vmax.f32 %v897_v9, 0.0  ;;  %v911_v28 = vmax.f32 %v879_v14, 0.0  ;;  %v927_v29 = vmax.f32 %v895_v15, 0.0 }
 0x18a   : > { %v880_v20 = vadd.f32 %v2149_v26, %v841_v16  ;;  %v896_v21 = vadd.f32 %v2149_v26, %v857_v17  ;;  %v914_v25 = vmax.f32 %v882_v18, 0.0 }
 0x18b   : > { %v930_v27 = vmax.f32 %v898_v19, 0.0  ;;  %v1497_v32 = vpop.f32.mrb[8].mxu0  ;;  %v1513_v33 = vpop.f32.mrb[8].mxu1 }
 0x18c   : > { %v912_v30 = vmax.f32 %v880_v20, 0.0  ;;  %v928_v31 = vmax.f32 %v896_v21, 0.0  ;;  %v1370_v34 = vpack.c.bf16 %v914_v25, %v913_v22  ;;  %v846_v36 = vmul.f32 %v1497_v32, %v2147_v24  ;;  %v635_v38 = vpop.f32.mrb[9].mxu0  ;;  %v699_v39 = vpop.f32.mrb[9].mxu1 }
 0x18d   : > { %v1410_v35 = vpack.c.bf16 %v930_v27, %v929_v23  ;;  %v862_v37 = vmul.f32 %v1513_v33, %v2147_v24  ;;  %v844_v42 = vmul.f32 %v2147_v24, %v635_v38  ;;  %v860_v43 = vmul.f32 %v2147_v24, %v699_v39  ;;  %v1498_v44 = vpop.f32.mrb[10].mxu0  ;;  %v1514_v45 = vpop.f32.mrb[10].mxu1 }
 0x18e   : > { %v1365_v40 = vpack.c.bf16 %v912_v30, %v911_v28  ;;  %v1405_v41 = vpack.c.bf16 %v928_v31, %v927_v29  ;;  %1434 = vst [vmem:[%s2173_s23 + $0x18] sm:$0xff] %v1370_v34   ;;  %v885_v46 = vadd.f32 %v2149_v26, %v846_v36  ;;  %v847_v48 = vmul.f32 %v1498_v44, %v2147_v24  ;;  %v638_v50 = vpop.f32.mrb[11].mxu0  ;;  %v702_v51 = vpop.f32.mrb[11].mxu1 }
 0x18f   : > { %1442 = vst [vmem:[%s2173_s23 + $0x58] sm:$0xff] %v1410_v35   ;;  %v901_v47 = vadd.f32 %v2149_v26, %v862_v37  ;;  %v863_v49 = vmul.f32 %v1514_v45, %v2147_v24  ;;  %v883_v52 = vadd.f32 %v2149_v26, %v844_v42  ;;  %v899_v53 = vadd.f32 %v2149_v26, %v860_v43 }
 0x190   : > { %1433 = vst [vmem:[%s2173_s23 + $0x10] sm:$0xff] %v1365_v40   ;;  %1441 = vst [vmem:[%s2173_s23 + $0x50] sm:$0xff] %v1405_v41   ;;  %v845_v54 = vmul.f32 %v2147_v24, %v638_v50  ;;  %v861_v55 = vmul.f32 %v2147_v24, %v702_v51  ;;  %v886_v56 = vadd.f32 %v2149_v26, %v847_v48  ;;  %v917_v60 = vmax.f32 %v885_v46, 0.0 }
 0x191   : > { %v902_v57 = vadd.f32 %v2149_v26, %v863_v49  ;;  %v933_v61 = vmax.f32 %v901_v47, 0.0  ;;  %v915_v0 = vmax.f32 %v883_v52, 0.0  ;;  %v931_v1 = vmax.f32 %v899_v53, 0.0 }
 0x192   : > { %v884_v58 = vadd.f32 %v2149_v26, %v845_v54  ;;  %v900_v59 = vadd.f32 %v2149_v26, %v861_v55  ;;  %v918_v62 = vmax.f32 %v886_v56, 0.0 }
 0x193   : > { %v934_v63 = vmax.f32 %v902_v57, 0.0  ;;  %v1501_v4 = vpop.f32.mrb[12].mxu0  ;;  %v1517_v5 = vpop.f32.mrb[12].mxu1 }
 0x194   : > { %v916_v2 = vmax.f32 %v884_v58, 0.0  ;;  %v932_v3 = vmax.f32 %v900_v59, 0.0  ;;  %v1380_v6 = vpack.c.bf16 %v918_v62, %v917_v60  ;;  %v850_v8 = vmul.f32 %v1501_v4, %v2147_v24  ;;  %v651_v10 = vpop.f32.mrb[13].mxu0  ;;  %v715_v11 = vpop.f32.mrb[13].mxu1 }
 0x195   : > { %v1420_v7 = vpack.c.bf16 %v934_v63, %v933_v61  ;;  %v866_v9 = vmul.f32 %v1517_v5, %v2147_v24  ;;  %v848_v14 = vmul.f32 %v2147_v24, %v651_v10  ;;  %v864_v15 = vmul.f32 %v2147_v24, %v715_v11  ;;  %v1502_v16 = vpop.f32.mrb[14].mxu0  ;;  %v1518_v17 = vpop.f32.mrb[14].mxu1 }
 0x196   : > { %v1375_v12 = vpack.c.bf16 %v916_v2, %v915_v0  ;;  %v1415_v13 = vpack.c.bf16 %v932_v3, %v931_v1  ;;  %1436 = vst [vmem:[%s2173_s23 + $0x28] sm:$0xff] %v1380_v6   ;;  %v889_v18 = vadd.f32 %v2149_v26, %v850_v8  ;;  %v851_v20 = vmul.f32 %v1502_v16, %v2147_v24  ;;  %v654_v22 = vpop.f32.mrb[15].mxu0  ;;  %v718_v23 = vpop.f32.mrb[15].mxu1 }
 0x197   : > { %1444 = vst [vmem:[%s2173_s23 + $0x68] sm:$0xff] %v1420_v7   ;;  %v905_v19 = vadd.f32 %v2149_v26, %v866_v9  ;;  %v867_v21 = vmul.f32 %v1518_v17, %v2147_v24  ;;  %v887_v25 = vadd.f32 %v2149_v26, %v848_v14  ;;  %v903_v27 = vadd.f32 %v2149_v26, %v864_v15 }
 0x198   : > { %1435 = vst [vmem:[%s2173_s23 + $0x20] sm:$0xff] %v1375_v12   ;;  %1443 = vst [vmem:[%s2173_s23 + $0x60] sm:$0xff] %v1415_v13   ;;  %v849_v28 = vmul.f32 %v2147_v24, %v654_v22  ;;  %v865_v29 = vmul.f32 %v2147_v24, %v718_v23  ;;  %v890_v30 = vadd.f32 %v2149_v26, %v851_v20  ;;  %v921_v34 = vmax.f32 %v889_v18, 0.0 }
 0x199   : > { %v906_v31 = vadd.f32 %v2149_v26, %v867_v21  ;;  %v937_v35 = vmax.f32 %v905_v19, 0.0  ;;  %v919_v24 = vmax.f32 %v887_v25, 0.0  ;;  %v935_v38 = vmax.f32 %v903_v27, 0.0 }
 0x19a   : > { %v888_v32 = vadd.f32 %v2149_v26, %v849_v28  ;;  %v904_v33 = vadd.f32 %v2149_v26, %v865_v29  ;;  %v922_v36 = vmax.f32 %v890_v30, 0.0 }
 0x19b   : > { %v938_v37 = vmax.f32 %v906_v31, 0.0 }
 0x19c   : > { %v920_v39 = vmax.f32 %v888_v32, 0.0  ;;  %v936_v40 = vmax.f32 %v904_v33, 0.0  ;;  %v1390_v41 = vpack.c.bf16 %v922_v36, %v921_v34 }
 0x19d   : > { %v1430_v42 = vpack.c.bf16 %v938_v37, %v937_v35 }
 0x19e   : > { %v1385_v26 = vpack.c.bf16 %v920_v39, %v919_v24  ;;  %v1425_v43 = vpack.c.bf16 %v936_v40, %v935_v38  ;;  %1438 = vst [vmem:[%s2173_s23 + $0x38] sm:$0xff] %v1390_v41  }
 0x19f   : > { %1446 = vst [vmem:[%s2173_s23 + $0x78] sm:$0xff] %v1430_v42  }
 0x1a0   : > { %1437 = vst [vmem:[%s2173_s23 + $0x30] sm:$0xff] %v1385_v26   ;;  %1445 = vst [vmem:[%s2173_s23 + $0x70] sm:$0xff] %v1425_v43  }
 0x1a1   : > { %1783 = shalt.err (!%p1780_p13)
}
 0x1a2   : > { %s1784_s9 = scalar_lea.hbm %s2236_s18, 2048  ;;  %s1788_s21 = scalar_lea.hbm %s2294_s4, 147456 }
 0x1a3   : > { %p1785_p4 = scmp.ne.s32.totalorder %s2236_s18, %s1784_s9  ;;  %p1789_p11 = scmp.lt.u32.totalorder %s2236_s18, %s2294_s4 }
 0x1a4   : > { %p1790_p1 = scmp.lt.u32.totalorder %s1788_s21, %s1784_s9  ;;  %p1792_p12 = scmp.lt.u32.totalorder %s1784_s9, %s2236_s18 }
 0x1a5   : > { %p1786_p2 = pnand %p1785_p4, %p2050_p0 }
 0x1a6   : > { %p1791_p10 = por %p1790_p1, %p1789_p11 }
 0x1a7   : > { %p1787_p8 = pneg %p1786_p2 }
 0x1a8   : > { %p1793_p6 = por %p1792_p12, %p1791_p10 }
 0x1aa   : > { %p1794_p3 = pnand %p1793_p6, %p1787_p8 }
 0x1ac   : > { %1797 = shalt.err (!%p1794_p3)
}
 0x1ad   : > { %s1869_s23 = smov 64   ;;  %s1870_s25 = smov 4  }
 0x1ae   : > { %1549 = dma.vmem_to_hbm [thread:$0]  (%p2050_p0), %s2238_s27, 2048, %s2236_s18, %s1100_s24, %s1869_s23, %s1869_s23, %s1870_s25  }
 0x1af PF: > { %s2314_s5 = sld [smem:[#allocation16_spill]]  ;;  %p1576_p5 = scmp.ge.s32.totalorder %s1860_s20, 2 }
 0x1b0   : > { %s1129_s7 = sand.u32 1, %s1840_s15  }
 0x1b1   : > { %s1130_s6 = scalar_lea.sflag [#allocation5], %s1129_s7 }
 0x1b5   : > { %p2315_p7 = scmp.ne.s32.totalorder %s2314_s5, 0 }
 0x1b7   : > { %p1566_p9 = pnand %p1576_p5, %p2315_p7 }
 0x1b9   : > { %1835 = dma.done.wait (!%p1566_p9), %s1130_s6, 2048  }
 0x1ba   : > { %1837 = vsyncadd (!%p1566_p9), %s1130_s6, 4294965248  ;;  %s22_s20 = sadd.s32 1, %s1860_s20   ;;  %s2316_s15 = smov %s1844_s16 }
 0x1bb   : > { %p19_p13 = scmp.ge.s32.totalorder %s22_s20, 74   ;;  %s2317_s16 = smov %s1848_s17 }
 0x1bc   : > { %s2318_s17 = smov %s2062_s22  ;;  %s2319_s18 = smov %s1856_s19 }
 0x1bd   : > { %s2320_s19 = smov %s2322_s11  ;;  %21 = sbr.rel (!%p19_p13) target bundleno = 8 (0x8), region = 104 }
 0x1c4   :  { %1135 = vsyncpa [#allocation4], 1 }
 0x1c5   :  { %1137 = vsyncpa [#allocation4 + $0x1], 1 }
 0x1c6   :  { %1138 = vsyncpa [#allocation7], 1 }
 0x1c7   :  { %1139 = vsyncpa [#allocation10], 1 }
 0x1c8   :  { %1140 = vsyncpa [#allocation5], 1 }
 0x1c9   :  { %1142 = vsyncpa [#allocation5 + $0x1], 1 }

</bundles_post_ra>
